<compile_context>
chip_gen: v5e
topology: v5e:2x2
jax: 0.10.0
libtpu: 0.0.40
codegen_flags: <defaults>
</compile_context>

<pallas_src>
import functools

import jax
import jax.numpy as jnp
from jax.experimental import pallas as pl
from jax.experimental.pallas import tpu as pltpu


def _make_kernel(nb, c_in, c_out, H, W):
    H2, W2 = H // 2, W // 2
    rows_in = c_in * H2     # real (non-padded) output rows per sample
    rows_out = c_out * H2   # total output rows per sample
    pad_rows = rows_out - rows_in

    def kernel(x_ref, s_ref, o_ref):
        # x_ref: (nb * c_in * H, W)   -- nb samples, (channel, h) flattened
        # s_ref: (W, W2)              -- hoisted one-hot even-column selector
        # o_ref: (nb * c_out * H2, W2)

        # Even rows of the flattened (sample, channel, h) axis are exactly the
        # even-h rows (H is even), so one sublane-strided read selects
        # x[:, :, ::2, :] for the whole block.  No MXU, no iotas.
        rows = x_ref[pl.ds(0, nb * c_in * H2, stride=2), :]  # (nb*c_in*H2, W)

        # Even-column pick: rows @ S with S[i, j] = 1 iff i == 2*j (exact copy).
        # S is resident in VMEM across the whole grid (constant index_map).
        sub = jnp.dot(rows, s_ref[...], preferred_element_type=jnp.float32)
        sub = sub.astype(o_ref.dtype)                         # (nb*c_in*H2, W2)

        # Per-sample scatter: real channels, then zero padding.  nb is a small
        # static int, so this Python loop unrolls at trace time into static
        # sublane-aligned slice stores.
        for j in range(nb):
            src = j * rows_in
            dst = j * rows_out
            o_ref[dst:dst + rows_in, :] = sub[src:src + rows_in, :]
            if pad_rows > 0:
                o_ref[dst + rows_in:dst + rows_out, :] = jnp.zeros(
                    (pad_rows, W2), dtype=o_ref.dtype)

    return kernel


@functools.partial(jax.jit, static_argnames=("n_out", "stride", "block_bytes"))
def downsample_a(x, n_out, stride=2, block_bytes=2 * 1024 * 1024):
    """Pallas TPU implementation of ResNet DownsampleA.forward (stride 2)."""
    assert stride == 2, "DownsampleA requires stride == 2"
    N, c_in, H, W = x.shape
    assert H % 2 == 0 and W % 2 == 0
    assert n_out >= c_in
    H2, W2 = H // 2, W // 2

    # Batch-block size: largest divisor of N whose input slab fits the byte
    # target.  Keeps double-buffered in+out well under the 32 MiB scoped VMEM
    # default on all of v5e / v6e / v7x while amortizing per-step overhead.
    per_sample = c_in * H * W * x.dtype.itemsize
    nb = 1
    for d in range(1, N + 1):
        if N % d == 0 and d * per_sample <= block_bytes:
            nb = d

    # Free contiguous reshape: (N, C, H, W) -> (N*C*H, W) keeps W minor.
    x2 = x.reshape(N * c_in * H, W)

    # Hoisted even-column selector, built once outside the kernel.
    S = (jnp.arange(W, dtype=jnp.int32)[:, None]
         == 2 * jnp.arange(W2, dtype=jnp.int32)[None, :]).astype(x.dtype)

    kernel = _make_kernel(nb, c_in, n_out, H, W)
    out2 = pl.pallas_call(
        kernel,
        out_shape=jax.ShapeDtypeStruct((N * n_out * H2, W2), x.dtype),
        grid=(N // nb,),
        in_specs=[
            pl.BlockSpec((nb * c_in * H, W), lambda b: (b, 0)),
            pl.BlockSpec((W, W2), lambda b: (0, 0)),  # resident selector
        ],
        out_specs=pl.BlockSpec((nb * n_out * H2, W2), lambda b: (b, 0)),
        compiler_params=pltpu.CompilerParams(
            dimension_semantics=("parallel",),
        ),
    )(x2, S)
    return out2.reshape(N, n_out, H2, W2)


if __name__ == "__main__":
    key = jax.random.PRNGKey(0)
    N, C_IN, H, W = 2, 4, 16, 16
    N_OUT = 8                  # DownsampleA(nIn=4, nOut=8, stride=2)

    x = jax.random.normal(key, (N, C_IN, H, W), dtype=jnp.float32)

    out = downsample_a(x, n_out=N_OUT, stride=2)
    out = jax.block_until_ready(out)

    # Pure-JAX reference.
    sub = x[:, :, ::2, ::2]
    ref = jnp.concatenate(
        [sub, jnp.zeros((N, N_OUT - C_IN, H // 2, W // 2), dtype=x.dtype)],
        axis=1)

    assert out.shape == (N, N_OUT, H // 2, W // 2), out.shape
    assert out.dtype == x.dtype
    assert jnp.allclose(out, ref), "mismatch vs reference"

    print("KERNEL_OK")
</pallas_src>

<mosaic_0001>
module attributes {stable_mosaic.version = 11 : i64} {
  func.func @kernel(%arg0: i32, %arg1: memref<128x16xf32, #tpu.memory_space<vmem>>, %arg2: memref<16x8xf32, #tpu.memory_space<vmem>>, %arg3: memref<128x8xf32, #tpu.memory_space<vmem>>) attributes {dimension_semantics = [#tpu.dimension_semantics<parallel>], iteration_bounds = array<i64: 1>, scalar_prefetch = 0 : i64, scratch_operands = 0 : i64, tpu.core_type = #tpu.core_type<tc>, window_params = [{transform_indices = @transform_0, window_bounds = array<i64: 128, 16>}, {pipeline_mode = #tpu.pipeline_mode<synchronous>, transform_indices = @transform_1, window_bounds = array<i64: 16, 8>}, {transform_indices = @transform_2, window_bounds = array<i64: 128, 8>}]} {
    %c0 = arith.constant 0 : index
    %c0_0 = arith.constant 0 : index
    %0 = tpu.strided_load %arg1[%c0, %c0_0] {strides = array<i32: 2, 1>} : memref<128x16xf32, #tpu.memory_space<vmem>>, vector<64x16xf32>
    %c0_1 = arith.constant 0 : index
    %c0_2 = arith.constant 0 : index
    %1 = vector.load %arg2[%c0_1, %c0_2] : memref<16x8xf32, #tpu.memory_space<vmem>>, vector<16x8xf32>
    %cst = arith.constant dense<0.000000e+00> : vector<64x8xf32>
    %2 = tpu.matmul %0, %1, %cst {dimension_numbers = #tpu.dot_dimension_numbers<[1], [0], [0], [1], [0, 0, 1, 1], [], []>} : vector<64x16xf32>, vector<16x8xf32>, vector<64x8xf32> -> vector<64x8xf32>
    %3 = vector.extract_strided_slice %2 {offsets = [0, 0], sizes = [32, 8], strides = [1, 1]} : vector<64x8xf32> to vector<32x8xf32>
    %c0_3 = arith.constant 0 : index
    %c0_4 = arith.constant 0 : index
    %4 = vector.load %arg3[%c0_3, %c0_4] : memref<128x8xf32, #tpu.memory_space<vmem>>, vector<32x8xf32>
    tpu.vector_store %arg3[%c0_3, %c0_4], %3 {strides = array<i32>} : memref<128x8xf32, #tpu.memory_space<vmem>>, vector<32x8xf32>,
    %cst_5 = arith.constant 0.000000e+00 : f32
    %5 = vector.broadcast %cst_5 : f32 to vector<32x8xf32>
    %c32 = arith.constant 32 : index
    %c0_6 = arith.constant 0 : index
    %6 = vector.load %arg3[%c32, %c0_6] : memref<128x8xf32, #tpu.memory_space<vmem>>, vector<32x8xf32>
    tpu.vector_store %arg3[%c32, %c0_6], %5 {strides = array<i32>} : memref<128x8xf32, #tpu.memory_space<vmem>>, vector<32x8xf32>,
    %7 = vector.extract_strided_slice %2 {offsets = [32, 0], sizes = [32, 8], strides = [1, 1]} : vector<64x8xf32> to vector<32x8xf32>
    %c64 = arith.constant 64 : index
    %c0_7 = arith.constant 0 : index
    %8 = vector.load %arg3[%c64, %c0_7] : memref<128x8xf32, #tpu.memory_space<vmem>>, vector<32x8xf32>
    tpu.vector_store %arg3[%c64, %c0_7], %7 {strides = array<i32>} : memref<128x8xf32, #tpu.memory_space<vmem>>, vector<32x8xf32>,
    %cst_8 = arith.constant 0.000000e+00 : f32
    %9 = vector.broadcast %cst_8 : f32 to vector<32x8xf32>
    %c96 = arith.constant 96 : index
    %c0_9 = arith.constant 0 : index
    %10 = vector.load %arg3[%c96, %c0_9] : memref<128x8xf32, #tpu.memory_space<vmem>>, vector<32x8xf32>
    tpu.vector_store %arg3[%c96, %c0_9], %9 {strides = array<i32>} : memref<128x8xf32, #tpu.memory_space<vmem>>, vector<32x8xf32>,
    return
  }
  func.func @transform_0(%arg0: i32) -> (i32, i32) {
    %c0_i32 = arith.constant 0 : i32
    %c0_i32_0 = arith.constant 0 : i32
    return %arg0, %c0_i32 : i32, i32
  }
  func.func @transform_1(%arg0: i32) -> (i32, i32) {
    %c0_i32 = arith.constant 0 : i32
    %c0_i32_0 = arith.constant 0 : i32
    %c0_i32_1 = arith.constant 0 : i32
    return %c0_i32, %c0_i32_0 : i32, i32
  }
  func.func @transform_2(%arg0: i32) -> (i32, i32) {
    %c0_i32 = arith.constant 0 : i32
    %c0_i32_0 = arith.constant 0 : i32
    return %arg0, %c0_i32 : i32, i32
  }
}

</mosaic_0001>

<bundles_post_ra>
// kernel: downsample_a.1
= control target key start
LH: loop header
LB: loop body
LE: loop exit
PB: predicated region body
PF: predicated region fallthrough
CT: control target
= control target key end

     0   :  { %7 = vsyncpa [#allocation3], 0  ;;  %s280_s0 = inlined_call_operand.hbm [shape: f32[128,16], index: 0, kind: input, shape index: {}]   ;;  %s281_s1 = inlined_call_operand.vmem [shape: f32[16,8], index: 1, kind: input, shape index: {}]   ;;  %s282_s2 = inlined_call_operand.hbm [shape: f32[128,8], index: 2, kind: output, shape index: {}]  }
   0x1   :  { %8 = vsyncpa [#allocation4], 0  ;;  %s13_s11 = sshll.u32 %s280_s0, 4  ;;  %s218_s12 = smov [#allocation2]   ;;  %s14_s11 = int_to_ptr.hbm [resolvable:$true] %s13_s11 }
   0x2   :  { %s15_s13 = sshll.u32 %s218_s12, 4  ;;  %s219_s14 = smov 128   ;;  %s16_s13 = int_to_ptr.vmem [resolvable:$true] %s15_s13 }
   0x3   :  { %s220_s15 = smov 8  }
   0x4   :  { %21 = dma.hbm_to_vmem [thread:$0]  %s14_s11, 2048, %s16_s13, [#allocation3], %s219_s14, %s219_s14, %s220_s15  }
   0x5   :  { %214 = dma.done.wait [#allocation3], 2048  }
   0x6   :  { %215 = vsyncadd [#allocation3], 4294965248  ;;  %v44_v0 = vld [vmem:[%s281_s1 + $0x8] sm:$0xff]  ;;  %v43_v1 = vld [vmem:[%s281_s1] sm:$0xff]  ;;  %vm45_vm0 = vcmask 130048   ;;  %vm111_vm1 = vcmask 64512  }
   0x7   :  { %156 = vmatpush.msra.mxu2 %v44_v0  ;;  %157 = vmatpush.msra.mxu3 %v44_v0  ;;  %v36_v2 = vld [vmem:[#allocation2 + $0x40] ss:$2 sm:$0xff]  ;;  %v38_v6 = vld [vmem:[#allocation2 + $0x50] ss:$2 sm:$0xff]  ;;  %v221_v10 = vmov 0.0   ;;  %s222_s0 = smov [#allocation5]  }
   0x8   :  { %v40_v3 = vld [vmem:[#allocation2 + $0x60] ss:$2 sm:$0xff]  ;;  %84 = vmatpush.msra.mxu0 %v44_v0  ;;  %155 = vmatpush.msra.mxu1 %v44_v0  ;;  %v42_v7 = vld [vmem:[#allocation2 + $0x70] ss:$2 sm:$0xff]  ;;  %116 = vst.msk [vmem:[#allocation5 + $0x20] sm:$0xff] %vm111_vm1, %v221_v10  ;;  %s132_s1 = sshll.u32 %s222_s0, 4  ;;  %s133_s1 = int_to_ptr.vmem [resolvable:$true] %s132_s1 }
   0x9   :  { %159 = vmatpush.msra.mxu2 %v43_v1  ;;  %160 = vmatpush.msra.mxu3 %v43_v1  ;;  %v28_v4 = vld [vmem:[#allocation2] ss:$2 sm:$0xff]  ;;  %v30_v8 = vld [vmem:[#allocation2 + $0x10] ss:$2 sm:$0xff]  ;;  %117 = vst.msk [vmem:[#allocation5 + $0x28] sm:$0xff] %vm111_vm1, %v221_v10  ;;  %s134_s22 = sshll.u32 %s282_s2, 4  ;;  %s135_s22 = int_to_ptr.hbm [resolvable:$true] %s134_s22 }
   0xa   :  { %v32_v5 = vld [vmem:[#allocation2 + $0x20] ss:$2 sm:$0xff]  ;;  %151 = vmatmul.msk.f32.vlgmr.msra.gmra.mxu2 %vm45_vm0, %v36_v2  ;;  %153 = vmatmul.msk.f32.vlgmr.msra.gmra.mxu3 %vm45_vm0, %v40_v3  ;;  %v34_v9 = vld [vmem:[#allocation2 + $0x30] ss:$2 sm:$0xff]  ;;  %118 = vst.msk [vmem:[#allocation5 + $0x30] sm:$0xff] %vm111_vm1, %v221_v10 }
   0xb   :  { %85 = vmatpush.msra.mxu0 %v43_v1  ;;  %158 = vmatpush.msra.mxu1 %v43_v1  ;;  %119 = vst.msk [vmem:[#allocation5 + $0x38] sm:$0xff] %vm111_vm1, %v221_v10 }
   0xc   :  { %147 = vmatmul.msk.f32.vlgmr.msra.gmra.mxu0 %vm45_vm0, %v28_v4  ;;  %149 = vmatmul.msk.f32.vlgmr.msra.gmra.mxu1 %vm45_vm0, %v32_v5  ;;  %124 = vst.msk [vmem:[#allocation5 + $0x60] sm:$0xff] %vm111_vm1, %v221_v10 }
   0xd   :  { %125 = vst.msk [vmem:[#allocation5 + $0x68] sm:$0xff] %vm111_vm1, %v221_v10 }
   0xe   :  { %126 = vst.msk [vmem:[#allocation5 + $0x70] sm:$0xff] %vm111_vm1, %v221_v10 }
   0xf   :  { %127 = vst.msk [vmem:[#allocation5 + $0x78] sm:$0xff] %vm111_vm1, %v221_v10 }
  0x12   :  { %152 = vmatmul.msk.f32.gmra.mxu2 %vm45_vm0, %v38_v6  ;;  %154 = vmatmul.msk.f32.gmra.mxu3 %vm45_vm0, %v42_v7 }
  0x14   :  { %148 = vmatmul.msk.f32.gmra.mxu0 %vm45_vm0, %v30_v8  ;;  %150 = vmatmul.msk.f32.gmra.mxu1 %vm45_vm0, %v34_v9 }
  0x89   :  { %v87_v11 = vpop.f32.mrf.mxu0  ;;  %v93_v12 = vpop.f32.mrf.mxu1 }
  0x8a   :  { %112 = vst.msk [vmem:[#allocation5] sm:$0xff] %vm111_vm1, %v87_v11 }
  0x8b   :  { %114 = vst.msk [vmem:[#allocation5 + $0x10] sm:$0xff] %vm111_vm1, %v93_v12 }
  0x8d   :  { %v99_v13 = vpop.f32.mrf.mxu2  ;;  %v105_v14 = vpop.f32.mrf.mxu3 }
  0x8e   :  { %120 = vst.msk [vmem:[#allocation5 + $0x40] sm:$0xff] %vm111_vm1, %v99_v13 }
  0x8f   :  { %122 = vst.msk [vmem:[#allocation5 + $0x50] sm:$0xff] %vm111_vm1, %v105_v14 }
  0x91   :  { %v90_v15 = vpop.f32.mrf.mxu0  ;;  %v96_v16 = vpop.f32.mrf.mxu1 }
  0x92   :  { %113 = vst.msk [vmem:[#allocation5 + $0x8] sm:$0xff] %vm111_vm1, %v90_v15 }
  0x93   :  { %115 = vst.msk [vmem:[#allocation5 + $0x18] sm:$0xff] %vm111_vm1, %v96_v16 }
  0x95   :  { %v102_v17 = vpop.f32.mrf.mxu2  ;;  %v108_v18 = vpop.f32.mrf.mxu3 }
  0x96   :  { %121 = vst.msk [vmem:[#allocation5 + $0x48] sm:$0xff] %vm111_vm1, %v102_v17 }
  0x97   :  { %123 = vst.msk [vmem:[#allocation5 + $0x58] sm:$0xff] %vm111_vm1, %v108_v18 }
  0x98   :  { %140 = dma.vmem_to_hbm [thread:$0]  %s133_s1, 2048, %s135_s22, [#allocation4], %s219_s14, %s219_s14, %s220_s15  }
  0x99   :  { %216 = dma.done.wait [#allocation4], 2048  }
  0x9a   :  { %217 = vsyncadd [#allocation4], 4294965248 }
  0x9b   :  { %145 = vsyncpa [#allocation3], 1 }
  0x9c   :  { %146 = vsyncpa [#allocation4], 1 }

</bundles_post_ra>
